<compile_context>
chip_gen: v6e
topology: v6e:2x2x1
jax: 0.10.0
libtpu: 0.0.40
codegen_flags: <defaults>
</compile_context>

<pallas_src>
import jax
import jax.numpy as jnp
from jax.experimental import pallas as pl
from jax.experimental.pallas import tpu as pltpu


def _conv1x1a_kernel(x_ref, mask_ref, o_ref):
    # x_ref   : VMEM (TR, HW) input tile
    # mask_ref: VMEM (TR, 1) f32 per-channel scale (conv * dropout_mask / (1-p))
    # o_ref   : VMEM (TR, HW) output tile
    x = x_ref[...].astype(jnp.float32)
    o_ref[...] = (x * mask_ref[...]).astype(o_ref.dtype)


def _round_up(v, m):
    return ((v + m - 1) // m) * m


def _vmem_budget_bytes():
    """Per-kernel VMEM budget for all double-buffered tiles.

    Conservative default fits v5e's 16 MiB scoped-VMEM default; v7x (fast HBM,
    32 MiB scoped default) gets a larger budget so per-step overhead is
    amortized over bigger tiles.
    """
    default = 12 * 1024 * 1024
    try:
        info = pltpu.get_tpu_info()
        name = str(getattr(info, "chip_version", "")).lower()
        if "7" in name:
            return 28 * 1024 * 1024
    except Exception:
        pass
    return default


def _pick_row_tile(nc, hw, itemsize, sublane, vmem_budget, min_steps=8):
    """Row tile that (a) keeps double-buffered in+out+mask inside vmem_budget,
    (b) yields at least ~min_steps grid steps so DMA read/write streams overlap
    and v7x's two TensorCores both engage, and (c) is sublane-aligned."""
    if nc <= sublane:
        return nc  # block equals full array dim -> always legal
    # VMEM bytes per row across one set of buffers:
    #   in + out tiles: 2 * hw * itemsize
    #   (tr, 1) f32 mask pads its lane dim to 128 in VMEM -> 128 * 4 bytes/row
    per_row = 2 * hw * itemsize + 128 * 4
    tr = max(sublane, (vmem_budget // (2 * per_row)) // sublane * sublane)
    # Keep the grid multi-step (>= min_steps): prerequisite for pipelining the
    # read/write streams and for the v7x two-TensorCore split.
    tr = min(tr, _round_up(pl.cdiv(nc, min_steps), sublane))
    tr = min(tr, (nc // sublane) * sublane)
    return int(max(tr, sublane))


def conv1x1_a_forward(x, conv_scalar, p, key, training=True, donate_input=False):
    """x: (N, C, H, W) array. conv_scalar: shape-(1,) parameter.

    If donate_input=True the output aliases x's buffer; this only saves HBM
    footprint/traffic when the caller actually donates x at the jit boundary
    (otherwise XLA inserts a defensive copy).
    """
    N, C, H, W = x.shape
    NC, HW = N * C, H * W
    itemsize = jnp.dtype(x.dtype).itemsize
    sublane = {4: 8, 2: 16, 1: 32}.get(itemsize, 8)

    # --- per-channel scale: fold conv_scalar (and dropout rescale) into the
    #     mask, kept in f32; the kernel multiplies in f32 and casts once.
    # TODO(synk): mask generation could move in-kernel (pltpu.prng_seed +
    # prng_random_bits) to drop this tiny input stream; kept host-side for
    # deterministic parity with the jax.random reference.
    scale = jnp.asarray(conv_scalar, dtype=jnp.float32).reshape(())
    if training and p > 0.0:
        keep = jax.random.bernoulli(key, 1.0 - p, (NC, 1))
        chan = keep.astype(jnp.float32) * (scale / jnp.float32(1.0 - p))
    else:
        chan = jnp.full((NC, 1), scale, dtype=jnp.float32)

    # --- lane-dense layout, no padding: (N*C, H*W).  If HW is not a multiple
    # of 128, the block's last dim equals the full array dim (legal).
    x2 = x.reshape(NC, HW)

    tr = _pick_row_tile(NC, HW, itemsize, sublane, _vmem_budget_bytes())
    grid = (pl.cdiv(NC, tr),)

    out2 = pl.pallas_call(
        _conv1x1a_kernel,
        out_shape=jax.ShapeDtypeStruct((NC, HW), x.dtype),
        grid=grid,
        in_specs=[
            pl.BlockSpec((tr, HW), lambda i: (i, 0)),  # x tile
            pl.BlockSpec((tr, 1), lambda i: (i, 0)),   # per-channel f32 scale
        ],
        out_specs=pl.BlockSpec((tr, HW), lambda i: (i, 0)),
        compiler_params=pltpu.CompilerParams(
            dimension_semantics=("parallel",),
        ),
        input_output_aliases=({0: 0} if donate_input else {}),
    )(x2, chan)

    return out2.reshape(N, C, H, W)


if __name__ == "__main__":
    key = jax.random.PRNGKey(0)
    k_x, k_w, k_drop = jax.random.split(key, 3)

    N, C, H, W = 2, 4, 16, 16
    p = 0.5

    x = jax.random.normal(k_x, (N, C, H, W), dtype=jnp.float32)
    # Deterministic parameter init mirroring torch.rand(1) * 0.001
    conv_param = jax.random.uniform(k_w, (1,), dtype=jnp.float32) * 0.001

    out = conv1x1_a_forward(x, conv_param, p, k_drop, training=True)
    out = jax.block_until_ready(out)

    # Pure-JAX reference with the same dropout mask for a correctness check.
    keep_ref = jax.random.bernoulli(k_drop, 1.0 - p, (N * C, 1))
    mask_ref = keep_ref.astype(jnp.float32) / (1.0 - p)
    ref = (conv_param[0] * x.reshape(N * C, H * W) * mask_ref).reshape(N, C, H, W)

    assert out.shape == (N, C, H, W)
    assert jnp.allclose(out, ref, atol=1e-6, rtol=1e-5)

    # Eval-mode path (no dropout) sanity check.
    out_eval = conv1x1_a_forward(x, conv_param, p, k_drop, training=False)
    out_eval = jax.block_until_ready(out_eval)
    assert jnp.allclose(out_eval, conv_param[0] * x, atol=1e-6, rtol=1e-5)

    # Exercise a non-multiple-of-128 spatial size (the 8x8 ResNet stage) to
    # confirm the unpadded full-width-block path compiles and is correct.
    x_small = jax.random.normal(k_x, (4, 16, 8, 8), dtype=jnp.float32)
    out_small = conv1x1_a_forward(x_small, conv_param, p, k_drop, training=False)
    out_small = jax.block_until_ready(out_small)
    assert jnp.allclose(out_small, conv_param[0] * x_small, atol=1e-6, rtol=1e-5)

    print("KERNEL_OK")
</pallas_src>

<mosaic_0001>
module attributes {stable_mosaic.version = 11 : i64} {
  func.func @_conv1x1a_kernel(%arg0: i32, %arg1: memref<8x256xf32, #tpu.memory_space<vmem>>, %arg2: memref<8x1xf32, #tpu.memory_space<vmem>>, %arg3: memref<8x256xf32, #tpu.memory_space<vmem>>) attributes {dimension_semantics = [#tpu.dimension_semantics<parallel>], iteration_bounds = array<i64: 1>, scalar_prefetch = 0 : i64, scratch_operands = 0 : i64, tpu.core_type = #tpu.core_type<tc>, window_params = [{transform_indices = @transform_0, window_bounds = array<i64: 8, 256>}, {transform_indices = @transform_1, window_bounds = array<i64: 8, 1>}, {transform_indices = @transform_2, window_bounds = array<i64: 8, 256>}]} {
    %c0 = arith.constant 0 : index
    %c0_0 = arith.constant 0 : index
    %0 = vector.load %arg1[%c0, %c0_0] : memref<8x256xf32, #tpu.memory_space<vmem>>, vector<8x256xf32>
    %c0_1 = arith.constant 0 : index
    %c0_2 = arith.constant 0 : index
    %1 = vector.load %arg2[%c0_1, %c0_2] : memref<8x1xf32, #tpu.memory_space<vmem>>, vector<8x1xf32>
    %2 = vector.broadcast %1 : vector<8x1xf32> to vector<8x256xf32>
    %3 = arith.mulf %0, %2 : vector<8x256xf32>
    %c0_3 = arith.constant 0 : index
    %c0_4 = arith.constant 0 : index
    %4 = vector.load %arg3[%c0_3, %c0_4] : memref<8x256xf32, #tpu.memory_space<vmem>>, vector<8x256xf32>
    tpu.vector_store %arg3[%c0_3, %c0_4], %3 {strides = array<i32>} : memref<8x256xf32, #tpu.memory_space<vmem>>, vector<8x256xf32>,
    return
  }
  func.func @transform_0(%arg0: i32) -> (i32, i32) {
    %c0_i32 = arith.constant 0 : i32
    %c0_i32_0 = arith.constant 0 : i32
    return %arg0, %c0_i32 : i32, i32
  }
  func.func @transform_1(%arg0: i32) -> (i32, i32) {
    %c0_i32 = arith.constant 0 : i32
    %c0_i32_0 = arith.constant 0 : i32
    return %arg0, %c0_i32 : i32, i32
  }
  func.func @transform_2(%arg0: i32) -> (i32, i32) {
    %c0_i32 = arith.constant 0 : i32
    %c0_i32_0 = arith.constant 0 : i32
    return %arg0, %c0_i32 : i32, i32
  }
}

</mosaic_0001>

<bundles_post_ra>
// kernel: tpu_custom_call.1
= control target key start
LH: loop header
LB: loop body
LE: loop exit
PB: predicated region body
PF: predicated region fallthrough
CT: control target
= control target key end

     0   :  { %7 = vsyncpa [#allocation3], 0  ;;  %s126_s0 = inlined_call_operand.hbm [shape: f32[8,256], index: 0, kind: input, shape index: {}]   ;;  %s127_s1 = inlined_call_operand.vmem [shape: f32[8,1], index: 1, kind: input, shape index: {}]   ;;  %s128_s2 = inlined_call_operand.hbm [shape: f32[8,256], index: 2, kind: output, shape index: {}]  }
   0x1   :  { %8 = vsyncpa [#allocation4], 0  ;;  %s99_s9 = smov [#allocation2]  }
   0x2   :  { %s15_s10 = sshll.u32 %s99_s9, 4  ;;  %s16_s10 = int_to_ptr.vmem [resolvable:$true] %s15_s10 }
   0x3   :  { %s63_s11 = scalar_lea.vmem %s16_s10, 256  ;;  %p68_p1 = scmp.lt.s32.totalorder %s16_s10, %s16_s10 }
   0x4   :  { %p64_p0 = scmp.ne.s32.totalorder %s16_s10, %s63_s11  ;;  %p69_p2 = scmp.lt.s32.totalorder %s63_s11, %s63_s11 }
   0x6   :  { %p70_p3 = por %p69_p2, %p68_p1 }
   0x8   :  { %p71_p4 = pnand %p70_p3, %p64_p0 }
   0xa   :  { %74 = shalt.err (!%p71_p4)
}
   0xb   :  { %18 = dma.hbm_to_vmem [thread:$0]  %s126_s0, 256, %s16_s10, [#allocation3]  }
   0xc   :  { %95 = dma.done.wait [#allocation3], 256  }
   0xd   :  { %96 = vsyncadd [#allocation3], 4294967040  ;;  %v100_v0 = vmov 0   ;;  %v26_v1 = vld [vmem:[%s127_s1] sm:$0xff]  ;;  %v25_v3 = vld [vmem:[#allocation2 + $0x8] sm:$0xff]  ;;  %s101_s16 = smov [#allocation5]  }
   0xe   :  { %54 = vset.pattern.permute.xlu0 %v100_v0  ;;  %v24_v2 = vld [vmem:[#allocation2] sm:$0xff]  ;;  %s42_s17 = sshll.u32 %s101_s16, 4  ;;  %s43_s17 = int_to_ptr.vmem [resolvable:$true] %s42_s17 }
   0xf   :  { %29 = vperm.xlu0 %54, %v26_v1   ;;  %s75_s0 = scalar_lea.vmem %s43_s17, 256  ;;  %p80_p6 = scmp.lt.s32.totalorder %s43_s17, %s43_s17 }
  0x10   :  { %p76_p5 = scmp.ne.s32.totalorder %s43_s17, %s75_s0  ;;  %p81_p7 = scmp.lt.s32.totalorder %s75_s0, %s75_s0 }
  0x12   :  { %p82_p8 = por %p81_p7, %p80_p6 }
  0x14   :  { %p83_p9 = pnand %p82_p8, %p76_p5 }
  0x8a   :  { %v30_v4 = vpop.permute.xlu0 %29 }
  0x8b   :  { %v32_v5 = vmul.f32 %v30_v4, %v24_v2  ;;  %v33_v6 = vmul.f32 %v30_v4, %v25_v3 }
  0x8d   :  { %34 = vst [vmem:[#allocation5] sm:$0xff] %v32_v5  ;;  %35 = vst [vmem:[#allocation5 + $0x8] sm:$0xff] %v33_v6 }
  0x8e   :  { %86 = shalt.err (!%p83_p9)
}
  0x8f   :  { %45 = dma.vmem_to_hbm [thread:$0]  %s43_s17, 256, %s128_s2, [#allocation4]  }
  0x90   :  { %97 = dma.done.wait [#allocation4], 256  }
  0x91   :  { %98 = vsyncadd [#allocation4], 4294967040 }
  0x92   :  { %49 = vsyncpa [#allocation3], 1 }
  0x93   :  { %50 = vsyncpa [#allocation4], 1 }

</bundles_post_ra>
